<compile_context>
chip_gen: v7x
topology: tpu7x:2x2x1
jax: 0.10.0
libtpu: 0.0.40
codegen_flags: <defaults>
</compile_context>

<pallas_src>
import functools

import jax
import jax.numpy as jnp
from jax.experimental import pallas as pl
from jax.experimental.pallas import tpu as pltpu


def _round_up(x, m):
    return ((x + m - 1) // m) * m


def _policy_kernel(bound_ref, x_ref, w1_ref, b1_ref, w2_ref, b2_ref, o_ref):
    # fc1: bf16 MXU matmul with f32 accumulation, then f32 bias + ReLU (VPU).
    # x and W1 arrive already in bf16 (cast hoisted out of the kernel).
    h = jnp.dot(x_ref[...], w1_ref[...], preferred_element_type=jnp.float32)
    h = jnp.maximum(h + b1_ref[...], 0.0)

    # fc2: bf16 MXU matmul with f32 accumulation, then f32 bias + tanh (EUP).
    a = jnp.dot(h.astype(jnp.bfloat16), w2_ref[...],
                preferred_element_type=jnp.float32)
    a = a + b2_ref[...]

    # Runtime action bound from SMEM scalar (no recompile when it changes).
    o_ref[...] = jnp.tanh(a) * bound_ref[0, 0]


def prepare_params(w1, b1, w2, b2):
    """One-time: pad params to lane-dense (128) shapes and cast weights to bf16.

    w1: [state_dim, hidden], b1: [1, hidden], w2: [hidden, action_dim],
    b2: [1, action_dim].  Returns (padded params tuple, action_dim).
    """
    state_dim, hidden_dim = w1.shape
    _, action_dim = w2.shape
    s_pad = _round_up(state_dim, 128)
    h_pad = _round_up(hidden_dim, 128)
    a_pad = _round_up(action_dim, 128)

    w1p = jnp.pad(jnp.asarray(w1, jnp.float32),
                  ((0, s_pad - state_dim), (0, h_pad - hidden_dim))
                  ).astype(jnp.bfloat16)
    b1p = jnp.pad(jnp.asarray(b1, jnp.float32),
                  ((0, 0), (0, h_pad - hidden_dim)))
    w2p = jnp.pad(jnp.asarray(w2, jnp.float32),
                  ((0, h_pad - hidden_dim), (0, a_pad - action_dim))
                  ).astype(jnp.bfloat16)
    b2p = jnp.pad(jnp.asarray(b2, jnp.float32),
                  ((0, 0), (0, a_pad - action_dim)))
    return (w1p, b1p, w2p, b2p), action_dim


@functools.partial(jax.jit, static_argnames=("action_dim", "block_batch"))
def policy_net_forward(x, w1p, b1p, w2p, b2p, action_bound, *,
                       action_dim, block_batch=1024):
    """x: [B, state_dim] (any float dtype); padded/pre-cast params from
    prepare_params; returns [B, action_dim] float32."""
    batch, state_dim = x.shape
    s_pad, h_pad = w1p.shape
    _, a_pad = w2p.shape

    # Batch tile: multiple of 16 (bf16 sublane packing), capped by block_batch.
    tb = _round_up(min(block_batch, batch), 16)
    # Ensure >= 2 grid steps for non-trivial batches so both v7x TensorCores
    # get work under dimension_semantics=("parallel",).
    if batch >= 32 and tb >= batch:
        tb = _round_up((batch + 1) // 2, 16)
    b_pad = _round_up(batch, tb)
    grid = (b_pad // tb,)

    # Zero-pad + bf16-cast x in one (jit-fused) op; zeros don't change the math.
    xp = jnp.pad(x.astype(jnp.bfloat16),
                 ((0, b_pad - batch), (0, s_pad - state_dim)))
    bound = jnp.asarray(action_bound, jnp.float32).reshape(1, 1)

    # Rough double-buffered VMEM footprint: streamed bf16 x + f32 out tiles
    # plus resident bf16 weights / f32 biases.  Only raise the scoped limit if
    # we would approach v5e's 16 MiB default.
    vmem_bytes = (2 * tb * (s_pad * 2 + a_pad * 4)
                  + (s_pad + a_pad) * h_pad * 2
                  + (h_pad + a_pad) * 4)
    vmem_limit = 2 * vmem_bytes if vmem_bytes > 12 * (1 << 20) else None

    out_padded = pl.pallas_call(
        _policy_kernel,
        out_shape=jax.ShapeDtypeStruct((b_pad, a_pad), jnp.float32),
        grid=grid,
        in_specs=[
            # Runtime scalar in SMEM.
            pl.BlockSpec(memory_space=pltpu.MemorySpace.SMEM),
            # x streams over the batch grid axis (bf16).
            pl.BlockSpec((tb, s_pad), lambda i: (i, 0)),
            # Weights / biases stay VMEM-resident (constant block index).
            pl.BlockSpec((s_pad, h_pad), lambda i: (0, 0)),
            pl.BlockSpec((1, h_pad), lambda i: (0, 0)),
            pl.BlockSpec((h_pad, a_pad), lambda i: (0, 0)),
            pl.BlockSpec((1, a_pad), lambda i: (0, 0)),
        ],
        out_specs=pl.BlockSpec((tb, a_pad), lambda i: (i, 0)),
        compiler_params=pltpu.CompilerParams(
            dimension_semantics=("parallel",),
            vmem_limit_bytes=vmem_limit,
        ),
    )(bound, xp, w1p, b1p, w2p, b2p)

    # Strip batch / action padding (padded rows hold tanh(b2)*bound garbage;
    # never reduce over out_padded before this slice).
    return out_padded[:batch, :action_dim]


def init_params(key, state_dim, hidden_dim, action_dim):
    """Deterministic init mimicking torch.nn.Linear (uniform +/- 1/sqrt(fan_in)).
    Weights stored as [in, out] (transposed vs. PyTorch's [out, in])."""
    k1, k2, k3, k4 = jax.random.split(key, 4)
    bound1 = 1.0 / jnp.sqrt(state_dim)
    bound2 = 1.0 / jnp.sqrt(hidden_dim)
    w1 = jax.random.uniform(k1, (state_dim, hidden_dim), jnp.float32, -bound1, bound1)
    b1 = jax.random.uniform(k2, (1, hidden_dim), jnp.float32, -bound1, bound1)
    w2 = jax.random.uniform(k3, (hidden_dim, action_dim), jnp.float32, -bound2, bound2)
    b2 = jax.random.uniform(k4, (1, action_dim), jnp.float32, -bound2, bound2)
    return w1, b1, w2, b2


def reference_forward_f32(x, w1, b1, w2, b2, action_bound):
    h = jnp.maximum(x @ w1 + b1, 0.0)
    return jnp.tanh(h @ w2 + b2) * action_bound


def reference_forward_bf16(x, w1, b1, w2, b2, action_bound):
    """Reference with the same bf16-in / f32-accumulate matmul policy."""
    h = jnp.dot(x.astype(jnp.bfloat16), w1.astype(jnp.bfloat16),
                preferred_element_type=jnp.float32) + b1
    h = jnp.maximum(h, 0.0)
    a = jnp.dot(h.astype(jnp.bfloat16), w2.astype(jnp.bfloat16),
                preferred_element_type=jnp.float32) + b2
    return jnp.tanh(a) * action_bound


if __name__ == "__main__":
    # Small DDPG-style shapes.
    batch, state_dim, hidden_dim, action_dim = 2, 4, 32, 2
    action_bound = 2.0

    key = jax.random.PRNGKey(0)
    k_x, k_p = jax.random.split(key)
    x = jax.random.normal(k_x, (batch, state_dim), jnp.float32)
    w1, b1, w2, b2 = init_params(k_p, state_dim, hidden_dim, action_dim)

    # One-time param preparation (pad + bf16 weight cast hoisted out of the
    # per-call path).
    (w1p, b1p, w2p, b2p), a_dim = prepare_params(w1, b1, w2, b2)

    out = policy_net_forward(x, w1p, b1p, w2p, b2p,
                             jnp.float32(action_bound), action_dim=a_dim)
    out = jax.block_until_ready(out)
    assert out.shape == (batch, action_dim)

    # Tight check against a reference using the same bf16-matmul policy.
    ref_bf16 = reference_forward_bf16(x, w1, b1, w2, b2, action_bound)
    assert jnp.allclose(out, ref_bf16, atol=1e-4, rtol=1e-4)

    # Loose check against the pure-f32 PyTorch-equivalent math (bf16 mantissa).
    ref_f32 = reference_forward_f32(x, w1, b1, w2, b2, action_bound)
    assert jnp.allclose(out, ref_f32, atol=3e-2, rtol=3e-2)

    print("KERNEL_OK")
</pallas_src>

<mosaic_0001>
module attributes {stable_mosaic.version = 11 : i64} {
  func.func @_policy_kernel(%arg0: i32, %arg1: memref<1x1xf32, #tpu.memory_space<smem>>, %arg2: memref<16x128xbf16, #tpu.memory_space<vmem>>, %arg3: memref<128x128xbf16, #tpu.memory_space<vmem>>, %arg4: memref<1x128xf32, #tpu.memory_space<vmem>>, %arg5: memref<128x128xbf16, #tpu.memory_space<vmem>>, %arg6: memref<1x128xf32, #tpu.memory_space<vmem>>, %arg7: memref<16x128xf32, #tpu.memory_space<vmem>>) attributes {dimension_semantics = [#tpu.dimension_semantics<parallel>], iteration_bounds = array<i64: 1>, scalar_prefetch = 0 : i64, scratch_operands = 0 : i64, tpu.core_type = #tpu.core_type<tc>, window_params = [{transform_indices = @transform_0, window_bounds = array<i64: 1, 1>}, {transform_indices = @transform_1, window_bounds = array<i64: 16, 128>}, {pipeline_mode = #tpu.pipeline_mode<synchronous>, transform_indices = @transform_2, window_bounds = array<i64: 128, 128>}, {pipeline_mode = #tpu.pipeline_mode<synchronous>, transform_indices = @transform_3, window_bounds = array<i64: 1, 128>}, {pipeline_mode = #tpu.pipeline_mode<synchronous>, transform_indices = @transform_4, window_bounds = array<i64: 128, 128>}, {pipeline_mode = #tpu.pipeline_mode<synchronous>, transform_indices = @transform_5, window_bounds = array<i64: 1, 128>}, {transform_indices = @transform_6, window_bounds = array<i64: 16, 128>}]} {
    %c0 = arith.constant 0 : index
    %c0_0 = arith.constant 0 : index
    %0 = vector.load %arg2[%c0, %c0_0] : memref<16x128xbf16, #tpu.memory_space<vmem>>, vector<16x128xbf16>
    %c0_1 = arith.constant 0 : index
    %c0_2 = arith.constant 0 : index
    %1 = vector.load %arg3[%c0_1, %c0_2] : memref<128x128xbf16, #tpu.memory_space<vmem>>, vector<128x128xbf16>
    %cst = arith.constant dense<0.000000e+00> : vector<16x128xf32>
    %2 = tpu.matmul %0, %1, %cst {dimension_numbers = #tpu.dot_dimension_numbers<[1], [0], [0], [1], [0, 0, 1, 1], [], []>} : vector<16x128xbf16>, vector<128x128xbf16>, vector<16x128xf32> -> vector<16x128xf32>
    %c0_3 = arith.constant 0 : index
    %c0_4 = arith.constant 0 : index
    %3 = vector.load %arg4[%c0_3, %c0_4] : memref<1x128xf32, #tpu.memory_space<vmem>>, vector<1x128xf32>
    %4 = vector.broadcast %3 : vector<1x128xf32> to vector<16x128xf32>
    %5 = arith.addf %2, %4 : vector<16x128xf32>
    %cst_5 = arith.constant 0.000000e+00 : f32
    %6 = vector.broadcast %cst_5 : f32 to vector<16x128xf32>
    %7 = arith.maximumf %5, %6 : vector<16x128xf32>
    %8 = arith.truncf %7 : vector<16x128xf32> to vector<16x128xbf16>
    %c0_6 = arith.constant 0 : index
    %c0_7 = arith.constant 0 : index
    %9 = vector.load %arg5[%c0_6, %c0_7] : memref<128x128xbf16, #tpu.memory_space<vmem>>, vector<128x128xbf16>
    %cst_8 = arith.constant dense<0.000000e+00> : vector<16x128xf32>
    %10 = tpu.matmul %8, %9, %cst_8 {dimension_numbers = #tpu.dot_dimension_numbers<[1], [0], [0], [1], [0, 0, 1, 1], [], []>} : vector<16x128xbf16>, vector<128x128xbf16>, vector<16x128xf32> -> vector<16x128xf32>
    %c0_9 = arith.constant 0 : index
    %c0_10 = arith.constant 0 : index
    %11 = vector.load %arg6[%c0_9, %c0_10] : memref<1x128xf32, #tpu.memory_space<vmem>>, vector<1x128xf32>
    %12 = vector.broadcast %11 : vector<1x128xf32> to vector<16x128xf32>
    %13 = arith.addf %10, %12 : vector<16x128xf32>
    %14 = math.tanh %13 : vector<16x128xf32>
    %c0_11 = arith.constant 0 : index
    %c0_12 = arith.constant 0 : index
    %15 = memref.load %arg1[%c0_11, %c0_12] : memref<1x1xf32, #tpu.memory_space<smem>>
    %16 = vector.broadcast %15 : f32 to vector<16x128xf32>
    %17 = arith.mulf %14, %16 : vector<16x128xf32>
    %c0_13 = arith.constant 0 : index
    %c0_14 = arith.constant 0 : index
    %18 = vector.load %arg7[%c0_13, %c0_14] : memref<16x128xf32, #tpu.memory_space<vmem>>, vector<16x128xf32>
    tpu.vector_store %arg7[%c0_13, %c0_14], %17 {strides = array<i32>} : memref<16x128xf32, #tpu.memory_space<vmem>>, vector<16x128xf32>,
    return
  }
  func.func @transform_0(%arg0: i32) -> (i32, i32) {
    %c0_i32 = arith.constant 0 : i32
    %c0_i32_0 = arith.constant 0 : i32
    %c0_i32_1 = arith.constant 0 : i32
    return %c0_i32, %c0_i32_0 : i32, i32
  }
  func.func @transform_1(%arg0: i32) -> (i32, i32) {
    %c0_i32 = arith.constant 0 : i32
    %c0_i32_0 = arith.constant 0 : i32
    return %arg0, %c0_i32 : i32, i32
  }
  func.func @transform_2(%arg0: i32) -> (i32, i32) {
    %c0_i32 = arith.constant 0 : i32
    %c0_i32_0 = arith.constant 0 : i32
    %c0_i32_1 = arith.constant 0 : i32
    return %c0_i32, %c0_i32_0 : i32, i32
  }
  func.func @transform_3(%arg0: i32) -> (i32, i32) {
    %c0_i32 = arith.constant 0 : i32
    %c0_i32_0 = arith.constant 0 : i32
    %c0_i32_1 = arith.constant 0 : i32
    return %c0_i32, %c0_i32_0 : i32, i32
  }
  func.func @transform_4(%arg0: i32) -> (i32, i32) {
    %c0_i32 = arith.constant 0 : i32
    %c0_i32_0 = arith.constant 0 : i32
    %c0_i32_1 = arith.constant 0 : i32
    return %c0_i32, %c0_i32_0 : i32, i32
  }
  func.func @transform_5(%arg0: i32) -> (i32, i32) {
    %c0_i32 = arith.constant 0 : i32
    %c0_i32_0 = arith.constant 0 : i32
    %c0_i32_1 = arith.constant 0 : i32
    return %c0_i32, %c0_i32_0 : i32, i32
  }
  func.func @transform_6(%arg0: i32) -> (i32, i32) {
    %c0_i32 = arith.constant 0 : i32
    %c0_i32_0 = arith.constant 0 : i32
    return %arg0, %c0_i32 : i32, i32
  }
}

</mosaic_0001>

<bundles_post_ra>
// kernel: policy_net_forward.1
= control target key start
LH: loop header
LB: loop body
LE: loop exit
PB: predicated region body
PF: predicated region fallthrough
CT: control target
= control target key end

     0   :  { %12 = vsyncpa [#allocation4], 0  ;;  %s537_s0 = inlined_call_operand.<no memory space> [shape: f32[1,1], index: 0, kind: input, shape index: {}]   ;;  %s538_s1 = inlined_call_operand.vmem [shape: bf16[16,128], index: 1, kind: input, shape index: {}]   ;;  %s539_s2 = inlined_call_operand.hbm [shape: bf16[128,128], index: 2, kind: input, shape index: {}]   ;;  %s540_s3 = inlined_call_operand.vmem [shape: f32[1,128], index: 3, kind: input, shape index: {}]   ;;  %s541_s4 = inlined_call_operand.hbm [shape: bf16[128,128], index: 4, kind: input, shape index: {}]   ;;  %s542_s5 = inlined_call_operand.vmem [shape: f32[1,128], index: 5, kind: input, shape index: {}]   ;;  %s543_s6 = inlined_call_operand.vmem [shape: f32[16,128], index: 6, kind: output, shape index: {}]  }
   0x1   :  { %13 = vsyncpa [#allocation6], 0  ;;  %s454_s21 = smov [#allocation3]   ;;  %s406_s25 = scalar_lea.hbm %s539_s2, 1024 }
   0x2   :  { %s23_s22 = sshll.u32 %s454_s21, 4  ;;  %p407_p0 = scmp.ne.s32.totalorder %s539_s2, %s406_s25  ;;  %s24_s22 = int_to_ptr.vmem [resolvable:$true] %s23_s22 }
   0x3   :  { %p410_p1 = scmp.lt.u32.totalorder %s406_s25, %s539_s2 }
   0x5   :  { %p412_p2 = pnand %p410_p1, %p407_p0 }
   0x7   :  { %415 = shalt.err (!%p412_p2)
}
   0x8   :  { %s416_s30 = scalar_lea.vmem %s24_s22, 1024  ;;  %p421_p4 = scmp.lt.s32.totalorder %s24_s22, %s24_s22 }
   0x9   :  { %p417_p3 = scmp.ne.s32.totalorder %s24_s22, %s416_s30  ;;  %p422_p5 = scmp.lt.s32.totalorder %s416_s30, %s416_s30 }
   0xb   :  { %p423_p6 = por %p422_p5, %p421_p4 }
   0xd   :  { %p424_p7 = pnand %p423_p6, %p417_p3 }
   0xf   :  { %427 = shalt.err (!%p424_p7)
}
  0x10   :  { %s455_s7 = smov 64   ;;  %s456_s8 = smov 4  }
  0x11   :  { %29 = dma.hbm_to_vmem [thread:$0]  %s539_s2, 1024, %s24_s22, [#allocation4], %s455_s7, %s455_s7, %s456_s8  }
  0x12   :  { %s457_s11 = smov [#allocation5]   ;;  %s428_s15 = scalar_lea.hbm %s541_s4, 1024 }
  0x13   :  { %s37_s12 = sshll.u32 %s457_s11, 4  ;;  %p429_p8 = scmp.ne.s32.totalorder %s541_s4, %s428_s15  ;;  %s38_s12 = int_to_ptr.vmem [resolvable:$true] %s37_s12 }
  0x14   :  { %p432_p9 = scmp.lt.u32.totalorder %s428_s15, %s541_s4 }
  0x16   :  { %p434_p10 = pnand %p432_p9, %p429_p8 }
  0x18   :  { %437 = shalt.err (!%p434_p10)
}
  0x19   :  { %s438_s20 = scalar_lea.vmem %s38_s12, 1024  ;;  %p443_p12 = scmp.lt.s32.totalorder %s38_s12, %s38_s12 }
  0x1a   :  { %p439_p11 = scmp.ne.s32.totalorder %s38_s12, %s438_s20  ;;  %p444_p13 = scmp.lt.s32.totalorder %s438_s20, %s438_s20 }
  0x1c   :  { %p445_p0 = por %p444_p13, %p443_p12 }
  0x1e   :  { %p446_p1 = pnand %p445_p0, %p439_p11 }
  0x20   :  { %449 = shalt.err (!%p446_p1)
}
  0x21   :  { %43 = dma.hbm_to_vmem [thread:$0]  %s541_s4, 1024, %s38_s12, [#allocation6], %s455_s7, %s455_s7, %s456_s8  }
  0x22   :  { %450 = dma.done.wait [#allocation4], 1024  }
  0x23   :  { %451 = vsyncadd [#allocation4], 4294966272 }
  0x24   :  { %452 = dma.done.wait [#allocation6], 1024  }
  0x25   :  { %453 = vsyncadd [#allocation6], 4294966272  ;;  %v458_v0 = vmov 0.0   ;;  %vm459_vm0 = vmmov 0   ;;  %v385_v1 = vld [vmem:[#allocation3] sm:$0xff]   ;;  %v386_v2 = vld [vmem:[#allocation3 + $0x8] sm:$0xff]   ;;  %v291_v35 = vstv %s537_s0 }
  0x26   :  { %339 = vmatprep.subr.bf16.mxu0 %v458_v0  ;;  %355 = vmatprep.mubr.msk.bf16.mxu0 %vm459_vm0, %v458_v0  ;;  %v387_v3 = vld [vmem:[#allocation3 + $0x10] sm:$0xff]   ;;  %v394_v4 = vld [vmem:[#allocation5] sm:$0xff]   ;;  %v388_v5 = vld [vmem:[#allocation3 + $0x18] sm:$0xff]  }
  0x27   :  { %359 = vmatprep.subr.bf16.mxu1 %v458_v0  ;;  %375 = vmatprep.mubr.msk.bf16.mxu1 %vm459_vm0, %v458_v0  ;;  %v395_v6 = vld [vmem:[#allocation5 + $0x8] sm:$0xff]   ;;  %v389_v7 = vld [vmem:[#allocation3 + $0x20] sm:$0xff]   ;;  %v396_v8 = vld [vmem:[#allocation5 + $0x10] sm:$0xff]  }
  0x28   :  { %340 = vmatpush3.bf16.msra.mxu0 %v385_v1  ;;  %360 = vmatpush3.bf16.msra.mxu1 %v394_v4  ;;  %v390_v9 = vld [vmem:[#allocation3 + $0x28] sm:$0xff]   ;;  %v397_v10 = vld [vmem:[#allocation5 + $0x18] sm:$0xff]   ;;  %v391_v11 = vld [vmem:[#allocation3 + $0x30] sm:$0xff]  }
  0x29   :  { %341 = vmatprep.subr.bf16.mxu0 %v458_v0  ;;  %361 = vmatprep.subr.bf16.mxu1 %v458_v0  ;;  %v398_v12 = vld [vmem:[#allocation5 + $0x20] sm:$0xff]   ;;  %v392_v13 = vld [vmem:[#allocation3 + $0x38] sm:$0xff]   ;;  %v399_v14 = vld [vmem:[#allocation5 + $0x28] sm:$0xff]  }
  0x2a   :  { %v393_v15 = vld [vmem:[%s538_s1] sm:$0xff]   ;;  %v400_v16 = vld [vmem:[#allocation5 + $0x30] sm:$0xff]   ;;  %v401_v17 = vld [vmem:[#allocation5 + $0x38] sm:$0xff]  }
  0x2b   :  { %v302_v18 = vld [vmem:[%s540_s3] ss:$0 sm:$0xff] }
  0x2c   :  { %342 = vmatpush3.bf16.msra.mxu0 %v386_v2  ;;  %362 = vmatpush3.bf16.msra.mxu1 %v395_v6  ;;  %v312_v28 = vld [vmem:[%s542_s5] ss:$0 sm:$0xff] }
  0x2d   :  { %343 = vmatprep.subr.bf16.mxu0 %v458_v0  ;;  %363 = vmatprep.subr.bf16.mxu1 %v458_v0 }
  0x30   :  { %344 = vmatpush3.bf16.msra.mxu0 %v387_v3  ;;  %364 = vmatpush3.bf16.msra.mxu1 %v396_v8 }
  0x31   :  { %345 = vmatprep.subr.bf16.mxu0 %v458_v0  ;;  %365 = vmatprep.subr.bf16.mxu1 %v458_v0 }
  0x34   :  { %346 = vmatpush3.bf16.msra.mxu0 %v388_v5  ;;  %366 = vmatpush3.bf16.msra.mxu1 %v397_v10 }
  0x35   :  { %347 = vmatprep.subr.bf16.mxu0 %v458_v0  ;;  %367 = vmatprep.subr.bf16.mxu1 %v458_v0 }
  0x38   :  { %348 = vmatpush3.bf16.msra.mxu0 %v389_v7  ;;  %368 = vmatpush3.bf16.msra.mxu1 %v398_v12 }
  0x39   :  { %349 = vmatprep.subr.bf16.mxu0 %v458_v0  ;;  %369 = vmatprep.subr.bf16.mxu1 %v458_v0 }
  0x3c   :  { %350 = vmatpush3.bf16.msra.mxu0 %v390_v9  ;;  %370 = vmatpush3.bf16.msra.mxu1 %v399_v14 }
  0x3d   :  { %351 = vmatprep.subr.bf16.mxu0 %v458_v0  ;;  %371 = vmatprep.subr.bf16.mxu1 %v458_v0 }
  0x40   :  { %352 = vmatpush3.bf16.msra.mxu0 %v391_v11  ;;  %372 = vmatpush3.bf16.msra.mxu1 %v400_v16 }
  0x41   :  { %353 = vmatprep.subr.bf16.mxu0 %v458_v0  ;;  %373 = vmatprep.subr.bf16.mxu1 %v458_v0 }
  0x44   :  { %354 = vmatpush3.bf16.msra.mxu0 %v392_v13  ;;  %374 = vmatpush3.bf16.msra.mxu1 %v401_v17 }
  0x47   :  { %356 = vmatmul.mubr.bf16.vlgmr.msra.gmra.mrb[0].mxu0 %v393_v15 }
 0x11a   :  { %v166_v19 = vpop.f32.mrb[0].mxu0 }
 0x11b   :  { %v167_v20 = vadd.f32 %v302_v18, %v166_v19  ;;  %v357_v21 = vpop.f32.mrb[1].mxu0 }
 0x11c   :  { %v169_v22 = vpop.f32.mrb[2].mxu0 }
 0x11d   :  { %v170_v23 = vadd.f32 %v302_v18, %v169_v22  ;;  %v358_v24 = vpop.f32.mrb[3].mxu0  ;;  %v173_v25 = vmax.f32 %v167_v20, 0.0 }
 0x11f   :  { %v174_v26 = vmax.f32 %v170_v23, 0.0 }
 0x121   :  { %v175_v27 = vpack.c.bf16 %v174_v26, %v173_v25 }
 0x123   :  { %376 = vmatmul.mubr.bf16.vlgmr.msra.gmra.mrb[0].mxu1 %v175_v27 }
 0x1f6   :  { %v281_v29 = vpop.f32.mrb[0].mxu1 }
 0x1f7   :  { %v282_v30 = vadd.f32 %v312_v28, %v281_v29  ;;  %v377_v31 = vpop.f32.mrb[1].mxu1 }
 0x1f8   :  { %v284_v32 = vpop.f32.mrb[2].mxu1 }
 0x1f9   :  { %402 = vtanh.f32 %v282_v30  ;;  %v285_v33 = vadd.f32 %v312_v28, %v284_v32  ;;  %v378_v34 = vpop.f32.mrb[3].mxu1 }
 0x1fb   :  { %404 = vtanh.f32 %v285_v33 }
 0x203   :  { %v403_v36 = vpop.eup %402 }
 0x204   :  { %v292_v37 = vmul.f32 %v403_v36, %v291_v35 }
 0x205   :  { %v405_v38 = vpop.eup %404 }
 0x206   :  { %294 = vst [vmem:[%s543_s6] sm:$0xff] %v292_v37  ;;  %v293_v39 = vmul.f32 %v405_v38, %v291_v35 }
 0x208   :  { %295 = vst [vmem:[%s543_s6 + $0x8] sm:$0xff] %v293_v39 }
 0x209   :  { %300 = vsyncpa [#allocation4], 1 }
 0x20a   :  { %301 = vsyncpa [#allocation6], 1 }

</bundles_post_ra>
